<compile_context>
chip_gen: v7x
topology: tpu7x:2x2x1
jax: 0.10.0
libtpu: 0.0.40
codegen_flags: <defaults>
</compile_context>

<pallas_src>
import functools

import jax
import jax.numpy as jnp
from jax.experimental import pallas as pl
from jax.experimental.pallas import tpu as pltpu

# Fixed 3x3 Sobel taps (row-major), exactly as in the PyTorch module.
_FX = ((1.0, 0.0, -1.0), (2.0, 0.0, -2.0), (1.0, 0.0, -1.0))
_FY = ((1.0, 2.0, 1.0), (0.0, 0.0, 0.0), (-1.0, -2.0, -1.0))


def _band(n, sub, diag, sup):
    """n x n banded matrix: `sub` on the subdiagonal, `diag` on the diagonal,
    `sup` on the superdiagonal, zeros elsewhere (zero rows/cols at the
    boundaries implement the zero padding of the conv)."""
    r = jnp.arange(n)[:, None]
    c = jnp.arange(n)[None, :]
    m = (jnp.where(r == c + 1, sub, 0.0)
         + jnp.where(r == c, diag, 0.0)
         + jnp.where(r == c - 1, sup, 0.0))
    return m.astype(jnp.float32)


def _grad_loss_kernel(fake_ref, real_ref, sy_ref, dy_ref, sx_ref, dx_ref,
                      out_ref, acc_ref, *, n_total, c_total):
    """Grid = (batch blocks [parallel], channel blocks [reduction]).

    fake_ref / real_ref : (BN, BC, H, W) input tiles.
    sy_ref / dy_ref     : (H, H) banded vertical smooth / difference operators.
    sx_ref / dx_ref     : (W, W) banded horizontal smooth / difference operators.
    out_ref             : (1, 8, 128) lane-dense partial-sum slab for this batch block.
    acc_ref             : (BN, H, W) f32 scratch, channel-sum of (real - fake).
    """
    i = pl.program_id(0)
    k = pl.program_id(1)
    nk = pl.num_programs(1)

    @pl.when(k == 0)
    def _():
        acc_ref[...] = jnp.zeros_like(acc_ref)

    diff = real_ref[...].astype(jnp.float32) - fake_ref[...].astype(jnp.float32)
    acc_ref[...] += jnp.sum(diff, axis=1)                      # (BN, H, W)

    @pl.when(k == nk - 1)
    def _():
        bn, h, w = acc_ref.shape
        # Channel mean of (real - fake); grad(real) - grad(fake) == grad(real - fake).
        d = acc_ref[...] * (1.0 / c_total)

        if n_total % bn != 0:
            # Mask images of the (padded) last batch block. Sublane iota over a
            # 2-D (BN, W) shape, broadcast across rows.
            bidx = jax.lax.broadcasted_iota(jnp.int32, (bn, w), 0)
            valid = (bidx + i * bn) < n_total                  # (BN, W)
            d = jnp.where(valid[:, None, :], d, 0.0)

        # Separable Sobel as banded matmuls on the MXU:
        #   gx = S_H @ (d @ D_W),   gy = D_H' @ (d @ S_W)
        dx = jnp.broadcast_to(dx_ref[...], (bn, w, w))
        sx = jnp.broadcast_to(sx_ref[...], (bn, w, w))
        sy = jnp.broadcast_to(sy_ref[...], (bn, h, h))
        dy = jnp.broadcast_to(dy_ref[...], (bn, h, h))
        hd = jnp.einsum('bhk,bkw->bhw', d, dx, preferred_element_type=jnp.float32)
        hs = jnp.einsum('bhk,bkw->bhw', d, sx, preferred_element_type=jnp.float32)
        gx = jnp.einsum('bik,bkw->biw', sy, hd, preferred_element_type=jnp.float32)
        gy = jnp.einsum('bik,bkw->biw', dy, hs, preferred_element_type=jnp.float32)

        s = jnp.sum(jnp.abs(gy)) + jnp.sum(jnp.abs(gx))

        row = jax.lax.broadcasted_iota(jnp.int32, (8, 128), 0)
        lane = jax.lax.broadcasted_iota(jnp.int32, (8, 128), 1)
        out_ref[...] = jnp.where((row == 0) & (lane == 0), s, 0.0)[None]


def _vmem_limit_bytes():
    """Per-generation scoped-VMEM request (v5e/v6e: 128 MiB physical, v7x: 64 MiB)."""
    try:
        cap = int(pltpu.get_tpu_info().vmem_capacity_bytes)
    except Exception:
        cap = 64 * 1024 * 1024          # conservative fallback (v7x physical VMEM)
    return min(cap // 2, 100 * 1024 * 1024)


def _choose_tiles(n, c, h, w, itemsize, vmem_limit):
    """Pick (BN, BC) so pipelined inputs + f32 intermediates fit the VMEM budget."""
    budget = int(vmem_limit * 0.6)                       # headroom for compiler temps
    mats = 2 * 2 * (h * h + w * w) * 4                   # resident banded operators (x2 buffers)

    def step_bytes(bn, bc):
        return (4 * bn * bc * h * w * itemsize           # 2 inputs x 2 pipeline buffers
                + 8 * bn * h * w * 4                     # acc scratch + d/hd/hs/gx/gy temps
                + 2 * bn * (h * h + w * w) * 4           # broadcast operators in the matmuls
                + mats)

    bc = None
    for cand in range(c, 0, -1):                         # largest divisor of C that fits
        if c % cand == 0 and step_bytes(1, cand) <= budget:
            bc = cand
            break
    if bc is None:
        bc = 1
        # TODO(synk): add H-tiling with a 1-row halo for images too large for a
        # single (1, 1, H, W) block in VMEM.

    bn = 1
    while bn < n:                                        # grow batch block while it fits
        nxt = min(2 * bn, n)
        if step_bytes(nxt, bc) > budget:
            break
        bn = nxt
    return bn, bc


def grad_loss(fake, real, *, block_n=None, block_c=None):
    """GradLoss.forward(fake, real) -> scalar f32. Inputs are NCHW."""
    n, c, h, w = fake.shape
    assert tuple(real.shape) == (n, c, h, w)

    vmem_limit = _vmem_limit_bytes()
    bn, bc = _choose_tiles(n, c, h, w, jnp.dtype(fake.dtype).itemsize, vmem_limit)
    if block_c is not None:
        assert c % block_c == 0, "block_c must divide the channel count"
        bc = int(block_c)
    if block_n is not None:
        bn = max(1, min(int(block_n), n))

    nb = pl.cdiv(n, bn)
    nk = c // bc

    # Banded operators for the separable Sobel.
    sy = _band(h, 1.0, 2.0, 1.0)      # vertical  [1, 2, 1] smoothing    (left-multiply)
    dy = _band(h, 1.0, 0.0, -1.0)     # vertical  [1, 0, -1] difference  (left-multiply)
    sx = _band(w, 1.0, 2.0, 1.0)      # horizontal [1, 2, 1] smoothing   (right-multiply)
    dx = _band(w, -1.0, 0.0, 1.0)     # horizontal [1, 0, -1] difference (right-multiply)

    kernel = functools.partial(_grad_loss_kernel, n_total=n, c_total=c)

    partials = pl.pallas_call(
        kernel,
        out_shape=jax.ShapeDtypeStruct((nb, 8, 128), jnp.float32),
        grid_spec=pltpu.PrefetchScalarGridSpec(
            num_scalar_prefetch=0,
            grid=(nb, nk),
            in_specs=[
                pl.BlockSpec((bn, bc, h, w), lambda i, k: (i, k, 0, 0)),   # fake
                pl.BlockSpec((bn, bc, h, w), lambda i, k: (i, k, 0, 0)),   # real
                pl.BlockSpec((h, h), lambda i, k: (0, 0)),                 # sy
                pl.BlockSpec((h, h), lambda i, k: (0, 0)),                 # dy
                pl.BlockSpec((w, w), lambda i, k: (0, 0)),                 # sx
                pl.BlockSpec((w, w), lambda i, k: (0, 0)),                 # dx
            ],
            out_specs=pl.BlockSpec((1, 8, 128), lambda i, k: (i, 0, 0)),
            scratch_shapes=[pltpu.VMEM((bn, h, w), jnp.float32)],
        ),
        compiler_params=pltpu.CompilerParams(
            dimension_semantics=("parallel", "arbitrary"),
            vmem_limit_bytes=int(vmem_limit)),
    )(fake, real, sy, dy, sx, dx)

    # Per-batch-block partial |grad| sums -> global mean over 2*N*H*W elements.
    return jnp.sum(partials) / float(2 * n * h * w)


def _ref_grad_loss(fake, real):
    """Pure-JAX, tap-based reference of the PyTorch module (for checking)."""
    fx = jnp.array(_FX, jnp.float32)
    fy = jnp.array(_FY, jnp.float32)

    def grads(img):
        m = jnp.mean(img.astype(jnp.float32), axis=1)          # (N, H, W)
        _, h, w = m.shape
        p = jnp.pad(m, ((0, 0), (1, 1), (1, 1)))
        gx = sum(fx[a, b] * p[:, a:a + h, b:b + w]
                 for a in range(3) for b in range(3))
        gy = sum(fy[a, b] * p[:, a:a + h, b:b + w]
                 for a in range(3) for b in range(3))
        return gy, gx

    gy_f, gx_f = grads(fake)
    gy_r, gx_r = grads(real)
    diffs = jnp.concatenate(
        [jnp.abs(gy_r - gy_f).ravel(), jnp.abs(gx_r - gx_f).ravel()])
    return jnp.mean(diffs)


if __name__ == "__main__":
    key = jax.random.PRNGKey(0)
    k1, k2, k3, k4 = jax.random.split(key, 4)

    # Case 1: module-sized example, auto-chosen tiling (single grid step).
    N, C, H, W = 2, 4, 16, 16
    fake = jax.random.normal(k1, (N, C, H, W), dtype=jnp.float32)
    real = jax.random.normal(k2, (N, C, H, W), dtype=jnp.float32)
    loss = grad_loss(fake, real)
    jax.block_until_ready(loss)
    ref = _ref_grad_loss(fake, real)
    assert jnp.allclose(loss, ref, rtol=1e-5, atol=1e-5), (loss, ref)

    # Case 2: exercises the parallel batch axis, the channel-reduction axis and
    # batch-remainder masking (N=5 with BN=2, C=4 with BC=2 -> grid (3, 2)).
    N2 = 5
    fake2 = jax.random.normal(k3, (N2, C, H, W), dtype=jnp.float32)
    real2 = jax.random.normal(k4, (N2, C, H, W), dtype=jnp.float32)
    loss2 = grad_loss(fake2, real2, block_n=2, block_c=2)
    jax.block_until_ready(loss2)
    ref2 = _ref_grad_loss(fake2, real2)
    assert jnp.allclose(loss2, ref2, rtol=1e-5, atol=1e-5), (loss2, ref2)

    print("KERNEL_OK")
</pallas_src>

<mosaic_0001>
module attributes {stable_mosaic.version = 11 : i64} {
  func.func @_grad_loss_kernel(%arg0: i32, %arg1: i32, %arg2: memref<2x4x16x16xf32, #tpu.memory_space<vmem>>, %arg3: memref<2x4x16x16xf32, #tpu.memory_space<vmem>>, %arg4: memref<16x16xf32, #tpu.memory_space<vmem>>, %arg5: memref<16x16xf32, #tpu.memory_space<vmem>>, %arg6: memref<16x16xf32, #tpu.memory_space<vmem>>, %arg7: memref<16x16xf32, #tpu.memory_space<vmem>>, %arg8: memref<1x8x128xf32, #tpu.memory_space<vmem>>, %arg9: memref<2x16x16xf32, #tpu.memory_space<vmem>>) attributes {dimension_semantics = [#tpu.dimension_semantics<parallel>, #tpu.dimension_semantics<arbitrary>], iteration_bounds = array<i64: 1, 1>, scalar_prefetch = 0 : i64, scratch_operands = 1 : i64, tpu.core_type = #tpu.core_type<tc>, window_params = [{transform_indices = @transform_0, window_bounds = array<i64: 2, 4, 16, 16>}, {transform_indices = @transform_1, window_bounds = array<i64: 2, 4, 16, 16>}, {pipeline_mode = #tpu.pipeline_mode<synchronous>, transform_indices = @transform_2, window_bounds = array<i64: 16, 16>}, {pipeline_mode = #tpu.pipeline_mode<synchronous>, transform_indices = @transform_3, window_bounds = array<i64: 16, 16>}, {pipeline_mode = #tpu.pipeline_mode<synchronous>, transform_indices = @transform_4, window_bounds = array<i64: 16, 16>}, {pipeline_mode = #tpu.pipeline_mode<synchronous>, transform_indices = @transform_5, window_bounds = array<i64: 16, 16>}, {transform_indices = @transform_6, window_bounds = array<i64: 1, 8, 128>}]} {
    %c0_i32 = arith.constant 0 : i32
    %0 = arith.cmpi eq, %arg1, %c0_i32 : i32
    %1 = arith.extui %0 : i1 to i32
    %c0_i32_0 = arith.constant 0 : i32
    %2 = arith.cmpi ne, %1, %c0_i32_0 : i32
    scf.if %2 {
      %cst_16 = arith.constant 0.000000e+00 : f32
      %13 = vector.broadcast %cst_16 : f32 to vector<2x16x16xf32>
      %c0_17 = arith.constant 0 : index
      %c0_18 = arith.constant 0 : index
      %c0_19 = arith.constant 0 : index
      %14 = vector.load %arg9[%c0_17, %c0_18, %c0_19] : memref<2x16x16xf32, #tpu.memory_space<vmem>>, vector<2x16x16xf32>
      tpu.vector_store %arg9[%c0_17, %c0_18, %c0_19], %13 {strides = array<i32>} : memref<2x16x16xf32, #tpu.memory_space<vmem>>, vector<2x16x16xf32>,
    } else {
    }
    %c0 = arith.constant 0 : index
    %c0_1 = arith.constant 0 : index
    %c0_2 = arith.constant 0 : index
    %c0_3 = arith.constant 0 : index
    %3 = vector.load %arg3[%c0, %c0_1, %c0_2, %c0_3] : memref<2x4x16x16xf32, #tpu.memory_space<vmem>>, vector<2x4x16x16xf32>
    %c0_4 = arith.constant 0 : index
    %c0_5 = arith.constant 0 : index
    %c0_6 = arith.constant 0 : index
    %c0_7 = arith.constant 0 : index
    %4 = vector.load %arg2[%c0_4, %c0_5, %c0_6, %c0_7] : memref<2x4x16x16xf32, #tpu.memory_space<vmem>>, vector<2x4x16x16xf32>
    %5 = arith.subf %3, %4 : vector<2x4x16x16xf32>
    %c0_8 = arith.constant 0 : index
    %c0_9 = arith.constant 0 : index
    %c0_10 = arith.constant 0 : index
    %6 = vector.load %arg9[%c0_8, %c0_9, %c0_10] : memref<2x16x16xf32, #tpu.memory_space<vmem>>, vector<2x16x16xf32>
    %cst = arith.constant dense<0.000000e+00> : vector<2x16x16xf32>
    %7 = vector.multi_reduction <add>, %5, %cst [1] : vector<2x4x16x16xf32> to vector<2x16x16xf32>
    %8 = arith.addf %6, %7 : vector<2x16x16xf32>
    %c0_11 = arith.constant 0 : index
    %c0_12 = arith.constant 0 : index
    %c0_13 = arith.constant 0 : index
    %9 = vector.load %arg9[%c0_11, %c0_12, %c0_13] : memref<2x16x16xf32, #tpu.memory_space<vmem>>, vector<2x16x16xf32>
    tpu.vector_store %arg9[%c0_11, %c0_12, %c0_13], %8 {strides = array<i32>} : memref<2x16x16xf32, #tpu.memory_space<vmem>>, vector<2x16x16xf32>,
    %c0_i32_14 = arith.constant 0 : i32
    %10 = arith.cmpi eq, %arg1, %c0_i32_14 : i32
    %11 = arith.extui %10 : i1 to i32
    %c0_i32_15 = arith.constant 0 : i32
    %12 = arith.cmpi ne, %11, %c0_i32_15 : i32
    scf.if %12 {
      %c0_16 = arith.constant 0 : index
      %c0_17 = arith.constant 0 : index
      %c0_18 = arith.constant 0 : index
      %13 = vector.load %arg9[%c0_16, %c0_17, %c0_18] : memref<2x16x16xf32, #tpu.memory_space<vmem>>, vector<2x16x16xf32>
      %cst_19 = arith.constant 2.500000e-01 : f32
      %14 = vector.broadcast %cst_19 : f32 to vector<2x16x16xf32>
      %15 = arith.mulf %13, %14 : vector<2x16x16xf32>
      %c0_20 = arith.constant 0 : index
      %c0_21 = arith.constant 0 : index
      %16 = vector.load %arg7[%c0_20, %c0_21] : memref<16x16xf32, #tpu.memory_space<vmem>>, vector<16x16xf32>
      %17 = vector.shape_cast %16 : vector<16x16xf32> to vector<1x16x16xf32>
      %18 = vector.broadcast %17 : vector<1x16x16xf32> to vector<2x16x16xf32>
      %c0_22 = arith.constant 0 : index
      %c0_23 = arith.constant 0 : index
      %19 = vector.load %arg6[%c0_22, %c0_23] : memref<16x16xf32, #tpu.memory_space<vmem>>, vector<16x16xf32>
      %20 = vector.shape_cast %19 : vector<16x16xf32> to vector<1x16x16xf32>
      %21 = vector.broadcast %20 : vector<1x16x16xf32> to vector<2x16x16xf32>
      %c0_24 = arith.constant 0 : index
      %c0_25 = arith.constant 0 : index
      %22 = vector.load %arg4[%c0_24, %c0_25] : memref<16x16xf32, #tpu.memory_space<vmem>>, vector<16x16xf32>
      %23 = vector.shape_cast %22 : vector<16x16xf32> to vector<1x16x16xf32>
      %24 = vector.broadcast %23 : vector<1x16x16xf32> to vector<2x16x16xf32>
      %c0_26 = arith.constant 0 : index
      %c0_27 = arith.constant 0 : index
      %25 = vector.load %arg5[%c0_26, %c0_27] : memref<16x16xf32, #tpu.memory_space<vmem>>, vector<16x16xf32>
      %26 = vector.shape_cast %25 : vector<16x16xf32> to vector<1x16x16xf32>
      %27 = vector.broadcast %26 : vector<1x16x16xf32> to vector<2x16x16xf32>
      "tpu.trace_start"() <{level = 10 : i32, message = "bhk,bkw->bhw"}> : () -> ()
      %cst_28 = arith.constant dense<0.000000e+00> : vector<2x16x16xf32>
      %28 = tpu.matmul %15, %18, %cst_28 {dimension_numbers = #tpu.dot_dimension_numbers<[2], [1], [1], [2], [0, 0, 0, 1, 1, 2], [0], [0]>} : vector<2x16x16xf32>, vector<2x16x16xf32>, vector<2x16x16xf32> -> vector<2x16x16xf32>
      %cst_29 = arith.constant dense<0.000000e+00> : vector<2x16x16xf32>
      %29 = tpu.matmul %15, %21, %cst_29 {dimension_numbers = #tpu.dot_dimension_numbers<[2], [1], [1], [2], [0, 0, 0, 1, 1, 2], [0], [0]>} : vector<2x16x16xf32>, vector<2x16x16xf32>, vector<2x16x16xf32> -> vector<2x16x16xf32>
      "tpu.trace_stop"() : () -> ()
      "tpu.trace_start"() <{level = 10 : i32, message = "bik,bkw->biw"}> : () -> ()
      %cst_30 = arith.constant dense<0.000000e+00> : vector<2x16x16xf32>
      %30 = tpu.matmul %24, %28, %cst_30 {dimension_numbers = #tpu.dot_dimension_numbers<[2], [1], [1], [2], [0, 0, 0, 1, 1, 2], [0], [0]>} : vector<2x16x16xf32>, vector<2x16x16xf32>, vector<2x16x16xf32> -> vector<2x16x16xf32>
      %cst_31 = arith.constant dense<0.000000e+00> : vector<2x16x16xf32>
      %31 = tpu.matmul %27, %29, %cst_31 {dimension_numbers = #tpu.dot_dimension_numbers<[2], [1], [1], [2], [0, 0, 0, 1, 1, 2], [0], [0]>} : vector<2x16x16xf32>, vector<2x16x16xf32>, vector<2x16x16xf32> -> vector<2x16x16xf32>
      "tpu.trace_stop"() : () -> ()
      %32 = math.absf %31 : vector<2x16x16xf32>
      %33 = vector.shape_cast %32 : vector<2x16x16xf32> to vector<1x2x16x16xf32>
      %cst_32 = arith.constant dense<0.000000e+00> : vector<1xf32>
      %34 = vector.multi_reduction <add>, %33, %cst_32 [1, 2, 3] : vector<1x2x16x16xf32> to vector<1xf32>
      %35 = vector.shape_cast %34 : vector<1xf32> to vector<1x1x1x1xf32>
      %36 = vector.extract %35[0, 0, 0, 0] : f32 from vector<1x1x1x1xf32>
      %37 = math.absf %30 : vector<2x16x16xf32>
      %38 = vector.shape_cast %37 : vector<2x16x16xf32> to vector<1x2x16x16xf32>
      %cst_33 = arith.constant dense<0.000000e+00> : vector<1xf32>
      %39 = vector.multi_reduction <add>, %38, %cst_33 [1, 2, 3] : vector<1x2x16x16xf32> to vector<1xf32>
      %40 = vector.shape_cast %39 : vector<1xf32> to vector<1x1x1x1xf32>
      %41 = vector.extract %40[0, 0, 0, 0] : f32 from vector<1x1x1x1xf32>
      %42 = arith.addf %36, %41 : f32
      %43 = tpu.iota {dimensions = array<i32: 0>} : vector<8x128xi32>
      %44 = tpu.iota {dimensions = array<i32: 1>} : vector<8x128xi32>
      %c0_i32_34 = arith.constant 0 : i32
      %45 = vector.broadcast %c0_i32_34 : i32 to vector<8x128xi32>
      %46 = arith.cmpi eq, %43, %45 : vector<8x128xi32>
      %c0_i32_35 = arith.constant 0 : i32
      %47 = vector.broadcast %c0_i32_35 : i32 to vector<8x128xi32>
      %48 = arith.cmpi eq, %44, %47 : vector<8x128xi32>
      %49 = arith.andi %46, %48 : vector<8x128xi1>
      %cst_36 = arith.constant 0.000000e+00 : f32
      %50 = vector.broadcast %42 : f32 to vector<8x128xf32>
      %51 = vector.broadcast %cst_36 : f32 to vector<8x128xf32>
      %52 = arith.select %49, %50, %51 : vector<8x128xi1>, vector<8x128xf32>
      %53 = vector.shape_cast %52 : vector<8x128xf32> to vector<1x8x128xf32>
      %c0_37 = arith.constant 0 : index
      %c0_38 = arith.constant 0 : index
      %c0_39 = arith.constant 0 : index
      %54 = vector.load %arg8[%c0_37, %c0_38, %c0_39] : memref<1x8x128xf32, #tpu.memory_space<vmem>>, vector<1x8x128xf32>
      tpu.vector_store %arg8[%c0_37, %c0_38, %c0_39], %53 {strides = array<i32>} : memref<1x8x128xf32, #tpu.memory_space<vmem>>, vector<1x8x128xf32>,
    } else {
    }
    return
  }
  func.func @transform_0(%arg0: i32, %arg1: i32) -> (i32, i32, i32, i32) {
    %c0_i32 = arith.constant 0 : i32
    %c0_i32_0 = arith.constant 0 : i32
    %c0_i32_1 = arith.constant 0 : i32
    return %arg0, %arg1, %c0_i32, %c0_i32_0 : i32, i32, i32, i32
  }
  func.func @transform_1(%arg0: i32, %arg1: i32) -> (i32, i32, i32, i32) {
    %c0_i32 = arith.constant 0 : i32
    %c0_i32_0 = arith.constant 0 : i32
    %c0_i32_1 = arith.constant 0 : i32
    return %arg0, %arg1, %c0_i32, %c0_i32_0 : i32, i32, i32, i32
  }
  func.func @transform_2(%arg0: i32, %arg1: i32) -> (i32, i32) {
    %c0_i32 = arith.constant 0 : i32
    %c0_i32_0 = arith.constant 0 : i32
    %c0_i32_1 = arith.constant 0 : i32
    return %c0_i32, %c0_i32_0 : i32, i32
  }
  func.func @transform_3(%arg0: i32, %arg1: i32) -> (i32, i32) {
    %c0_i32 = arith.constant 0 : i32
    %c0_i32_0 = arith.constant 0 : i32
    %c0_i32_1 = arith.constant 0 : i32
    return %c0_i32, %c0_i32_0 : i32, i32
  }
  func.func @transform_4(%arg0: i32, %arg1: i32) -> (i32, i32) {
    %c0_i32 = arith.constant 0 : i32
    %c0_i32_0 = arith.constant 0 : i32
    %c0_i32_1 = arith.constant 0 : i32
    return %c0_i32, %c0_i32_0 : i32, i32
  }
  func.func @transform_5(%arg0: i32, %arg1: i32) -> (i32, i32) {
    %c0_i32 = arith.constant 0 : i32
    %c0_i32_0 = arith.constant 0 : i32
    %c0_i32_1 = arith.constant 0 : i32
    return %c0_i32, %c0_i32_0 : i32, i32
  }
  func.func @transform_6(%arg0: i32, %arg1: i32) -> (i32, i32, i32) {
    %c0_i32 = arith.constant 0 : i32
    %c0_i32_0 = arith.constant 0 : i32
    %c0_i32_1 = arith.constant 0 : i32
    return %arg0, %c0_i32, %c0_i32_0 : i32, i32, i32
  }
}

</mosaic_0001>

<bundles_post_ra>
// kernel: tpu_custom_call.1
= control target key start
LH: loop header
LB: loop body
LE: loop exit
PB: predicated region body
PF: predicated region fallthrough
CT: control target
= control target key end

     0   :  { %11 = vsyncpa [#allocation4], 0  ;;  %s1389_s0 = inlined_call_operand.hbm [shape: f32[2,4,16,16], index: 0, kind: input, shape index: {}]   ;;  %s1390_s1 = inlined_call_operand.hbm [shape: f32[2,4,16,16], index: 1, kind: input, shape index: {}]   ;;  %s1391_s2 = inlined_call_operand.hbm [shape: f32[16,16], index: 2, kind: input, shape index: {}]   ;;  %s1392_s3 = inlined_call_operand.hbm [shape: f32[16,16], index: 3, kind: input, shape index: {}]   ;;  %s1393_s4 = inlined_call_operand.hbm [shape: f32[16,16], index: 4, kind: input, shape index: {}]   ;;  %s1394_s5 = inlined_call_operand.vmem [shape: f32[16,16], index: 5, kind: input, shape index: {}]   ;;  %s1395_s6 = inlined_call_operand.hbm [shape: f32[1,8,128], index: 6, kind: output, shape index: {}]  }
   0x1   :  { %12 = vsyncpa [#allocation7], 0 }
   0x2   :  { %13 = vsyncpa [#allocation10], 0 }
   0x3   :  { %14 = vsyncpa [#allocation5], 0  ;;  %s1190_s21 = smov [#allocation6]   ;;  %s1191_s23 = smov [#allocation9]  }
   0x4   :  { %s32_s22 = sshll.u32 %s1190_s21, 4  ;;  %s56_s24 = sshll.u32 %s1191_s23, 4  ;;  %s33_s22 = int_to_ptr.vmem [resolvable:$true] %s32_s22  ;;  %s1234_s24 = int_to_ptr.vmem [resolvable:$true] %s56_s24 }
   0x5   :  { %s1050_s27 = scalar_lea.hbm %s1390_s1, 2048 }
   0x6   :  { %p1051_p0 = scmp.ne.s32.totalorder %s1390_s1, %s1050_s27  ;;  %p1054_p1 = scmp.lt.u32.totalorder %s1050_s27, %s1390_s1 }
   0x8   :  { %p1056_p2 = pnand %p1054_p1, %p1051_p0 }
   0xa   :  { %1059 = shalt.err (!%p1056_p2)
}
   0xb   :  { %s1060_s8 = scalar_lea.vmem %s33_s22, 2048  ;;  %p1065_p4 = scmp.lt.s32.totalorder %s33_s22, %s33_s22 }
   0xc   :  { %p1061_p3 = scmp.ne.s32.totalorder %s33_s22, %s1060_s8  ;;  %p1066_p5 = scmp.lt.s32.totalorder %s1060_s8, %s1060_s8 }
   0xe   :  { %p1067_p6 = por %p1066_p5, %p1065_p4 }
  0x10   :  { %p1068_p7 = pnand %p1067_p6, %p1061_p3 }
  0x12   :  { %1071 = shalt.err (!%p1068_p7)
}
  0x13   :  { %s1192_s9 = smov 128   ;;  %s1193_s10 = smov 8  }
  0x14   :  { %38 = dma.hbm_to_vmem [thread:$0]  %s1390_s1, 2048, %s33_s22, [#allocation7], %s1192_s9, %s1192_s9, %s1193_s10  }
  0x15   :  { %s1072_s15 = scalar_lea.hbm %s1392_s3, 256 }
  0x16   :  { %p1073_p8 = scmp.ne.s32.totalorder %s1392_s3, %s1072_s15  ;;  %p1076_p9 = scmp.lt.u32.totalorder %s1072_s15, %s1392_s3 }
  0x18   :  { %p1078_p10 = pnand %p1076_p9, %p1073_p8 }
  0x1a   :  { %1081 = shalt.err (!%p1078_p10)
}
  0x1b   :  { %s1082_s20 = scalar_lea.vmem %s1234_s24, 256  ;;  %p1087_p12 = scmp.lt.s32.totalorder %s1234_s24, %s1234_s24 }
  0x1c   :  { %p1083_p11 = scmp.ne.s32.totalorder %s1234_s24, %s1082_s20  ;;  %p1088_p13 = scmp.lt.s32.totalorder %s1082_s20, %s1082_s20 }
  0x1e   :  { %p1089_p0 = por %p1088_p13, %p1087_p12 }
  0x20   :  { %p1090_p1 = pnand %p1089_p0, %p1083_p11 }
  0x22   :  { %1093 = shalt.err (!%p1090_p1)
}
  0x23   :  { %62 = dma.hbm_to_vmem [thread:$0]  %s1392_s3, 256, %s1234_s24, [#allocation10], %s1192_s9, %s1192_s9, %s1193_s10  }
  0x24   :  { %s1194_s22 = smov [#allocation3]   ;;  %s1195_s25 = smov [#allocation8]  }
  0x25   :  { %s20_s23 = sshll.u32 %s1194_s22, 4  ;;  %s44_s26 = sshll.u32 %s1195_s25, 4  ;;  %s21_s23 = int_to_ptr.vmem [resolvable:$true] %s20_s23  ;;  %s1271_s26 = int_to_ptr.vmem [resolvable:$true] %s44_s26 }
  0x26   :  { %s1094_s29 = scalar_lea.hbm %s1389_s0, 2048 }
  0x27   :  { %p1095_p2 = scmp.ne.s32.totalorder %s1389_s0, %s1094_s29  ;;  %p1098_p3 = scmp.lt.u32.totalorder %s1094_s29, %s1389_s0 }
  0x29   :  { %p1100_p4 = pnand %p1098_p3, %p1095_p2 }
  0x2b   :  { %1103 = shalt.err (!%p1100_p4)
}
  0x2c   :  { %s1104_s3 = scalar_lea.vmem %s21_s23, 2048  ;;  %p1109_p6 = scmp.lt.s32.totalorder %s21_s23, %s21_s23 }
  0x2d   :  { %p1105_p5 = scmp.ne.s32.totalorder %s21_s23, %s1104_s3  ;;  %p1110_p7 = scmp.lt.s32.totalorder %s1104_s3, %s1104_s3 }
  0x2f   :  { %p1111_p8 = por %p1110_p7, %p1109_p6 }
  0x31   :  { %p1112_p9 = pnand %p1111_p8, %p1105_p5 }
  0x33   :  { %1115 = shalt.err (!%p1112_p9)
}
  0x34   :  { %26 = dma.hbm_to_vmem [thread:$0]  %s1389_s0, 2048, %s21_s23, [#allocation4], %s1192_s9, %s1192_s9, %s1193_s10  }
  0x35   :  { %s1116_s15 = scalar_lea.hbm %s1391_s2, 256 }
  0x36   :  { %p1117_p10 = scmp.ne.s32.totalorder %s1391_s2, %s1116_s15  ;;  %p1120_p11 = scmp.lt.u32.totalorder %s1116_s15, %s1391_s2 }
  0x38   :  { %p1122_p12 = pnand %p1120_p11, %p1117_p10 }
  0x3a   :  { %1125 = shalt.err (!%p1122_p12)
}
  0x3b   :  { %s1126_s20 = scalar_lea.vmem %s1271_s26, 256  ;;  %p1131_p0 = scmp.lt.s32.totalorder %s1271_s26, %s1271_s26 }
  0x3c   :  { %p1127_p13 = scmp.ne.s32.totalorder %s1271_s26, %s1126_s20  ;;  %p1132_p1 = scmp.lt.s32.totalorder %s1126_s20, %s1126_s20 }
  0x3e   :  { %p1133_p2 = por %p1132_p1, %p1131_p0 }
  0x40   :  { %p1134_p3 = pnand %p1133_p2, %p1127_p13 }
  0x42   :  { %1137 = shalt.err (!%p1134_p3)
}
  0x43   :  { %50 = dma.hbm_to_vmem [thread:$0]  %s1391_s2, 256, %s1271_s26, [#allocation7], %s1192_s9, %s1192_s9, %s1193_s10  }
  0x44   :  { %s1196_s21 = smov [#allocation11]   ;;  %s1138_s27 = scalar_lea.hbm %s1393_s4, 256 }
  0x45   :  { %s68_s22 = sshll.u32 %s1196_s21, 4  ;;  %p1139_p4 = scmp.ne.s32.totalorder %s1393_s4, %s1138_s27  ;;  %s69_s22 = int_to_ptr.vmem [resolvable:$true] %s68_s22 }
  0x46   :  { %p1142_p5 = scmp.lt.u32.totalorder %s1138_s27, %s1393_s4 }
  0x48   :  { %p1144_p6 = pnand %p1142_p5, %p1139_p4 }
  0x4a   :  { %1147 = shalt.err (!%p1144_p6)
}
  0x4b   :  { %s1148_s8 = scalar_lea.vmem %s69_s22, 256  ;;  %p1153_p8 = scmp.lt.s32.totalorder %s69_s22, %s69_s22 }
  0x4c   :  { %p1149_p7 = scmp.ne.s32.totalorder %s69_s22, %s1148_s8  ;;  %p1154_p9 = scmp.lt.s32.totalorder %s1148_s8, %s1148_s8 }
  0x4e   :  { %p1155_p10 = por %p1154_p9, %p1153_p8 }
  0x50   :  { %p1156_p11 = pnand %p1155_p10, %p1149_p7 }
  0x52   :  { %1159 = shalt.err (!%p1156_p11)
}
  0x53   :  { %74 = dma.hbm_to_vmem [thread:$0]  %s1393_s4, 256, %s69_s22, [#allocation10], %s1192_s9, %s1192_s9, %s1193_s10  }
  0x54   :  { %1182 = dma.done.wait [#allocation4], 2048  }
  0x55   :  { %1183 = vsyncadd [#allocation4], 4294965248 }
  0x56   :  { %1184 = dma.done.wait [#allocation7], 2304  }
  0x57   :  { %1185 = vsyncadd [#allocation7], 4294964992 }
  0x58   :  { %1186 = dma.done.wait [#allocation10], 512  }
  0x59   :  { %1187 = vsyncadd [#allocation10], 4294966784  ;;  %vm96_vm0 = vcmask 130048   ;;  %v1197_v0 = vmov 0.0   ;;  %v201_v1 = vld [vmem:[%s1394_s5] sm:$0xff]  ;;  %v202_v2 = vld [vmem:[%s1394_s5 + $0x8] sm:$0xff] }
  0x5a   :  { %97 = vst.msk [vmem:[#allocation2] sm:$0xff] %vm96_vm0, %v1197_v0  ;;  %98 = vst.msk [vmem:[#allocation2 + $0x8] sm:$0xff] %vm96_vm0, %v1197_v0  ;;  %v101_v3 = vld [vmem:[#allocation6] sm:$0xff]  ;;  %v1005_v4 = vpack.c.bf16 %v202_v2, %v201_v1  ;;  %v103_v5 = vld [vmem:[#allocation6 + $0x10] sm:$0xff]  ;;  %s1198_s24 = smov [#allocation12]  }
  0x5b   :  { %99 = vst.msk [vmem:[#allocation2 + $0x10] sm:$0xff] %vm96_vm0, %v1197_v0  ;;  %100 = vst.msk [vmem:[#allocation2 + $0x18] sm:$0xff] %vm96_vm0, %v1197_v0  ;;  %v105_v6 = vld [vmem:[#allocation6 + $0x20] sm:$0xff]  ;;  %v107_v7 = vld [vmem:[#allocation6 + $0x30] sm:$0xff]  ;;  %s890_s12 = sshll.u32 %s1198_s24, 4  ;;  %s891_s12 = int_to_ptr.vmem [resolvable:$true] %s890_s12 }
  0x5c   :  { %v117_v8 = vld [vmem:[#allocation3] sm:$0xff]  ;;  %v119_v9 = vld [vmem:[#allocation3 + $0x10] sm:$0xff]  ;;  %1006 = vmatprep.subr.bf16.mxu0 %v1005_v4  ;;  %1010 = vmatprep.subr.bf16.mxu1 %v1005_v4  ;;  %v102_v30 = vld [vmem:[#allocation6 + $0x8] sm:$0xff]  ;;  %s1160_s14 = scalar_lea.vmem %s891_s12, 128  ;;  %p1165_p13 = scmp.lt.s32.totalorder %s891_s12, %s891_s12 }
  0x5d   :  { %v121_v10 = vld [vmem:[#allocation3 + $0x20] sm:$0xff]  ;;  %v123_v11 = vld [vmem:[#allocation3 + $0x30] sm:$0xff]  ;;  %v133_v12 = vsub.f32 %v101_v3, %v117_v8  ;;  %v135_v13 = vsub.f32 %v103_v5, %v119_v9  ;;  %1008 = vmatpush3.bf16.msra.mxu0 %v1005_v4  ;;  %1012 = vmatpush3.bf16.msra.mxu1 %v1005_v4  ;;  %v104_v34 = vld [vmem:[#allocation6 + $0x18] sm:$0xff]  ;;  %p1161_p12 = scmp.ne.s32.totalorder %s891_s12, %s1160_s14  ;;  %p1166_p0 = scmp.lt.s32.totalorder %s1160_s14, %s1160_s14 }
  0x5e   :  { %v137_v14 = vsub.f32 %v105_v6, %v121_v10  ;;  %v109_v15 = vld [vmem:[#allocation6 + $0x40] sm:$0xff]  ;;  %v139_v16 = vsub.f32 %v107_v7, %v123_v11  ;;  %v111_v17 = vld [vmem:[#allocation6 + $0x50] sm:$0xff]  ;;  %v106_v35 = vld [vmem:[#allocation6 + $0x28] sm:$0xff] }
  0x5f   :  { %v113_v18 = vld [vmem:[#allocation6 + $0x60] sm:$0xff]  ;;  %v115_v19 = vld [vmem:[#allocation6 + $0x70] sm:$0xff]  ;;  %v154_v20 = vsel %vm96_vm0, %v133_v12, 0.0  ;;  %v155_v21 = vsel %vm96_vm0, %v135_v13, 0.0  ;;  %v108_v36 = vld [vmem:[#allocation6 + $0x38] sm:$0xff]  ;;  %p1167_p1 = por %p1166_p0, %p1165_p13 }
  0x60   :  { %v157_v22 = vsel %vm96_vm0, %v137_v14, 0.0  ;;  %v125_v23 = vld [vmem:[#allocation3 + $0x40] sm:$0xff]  ;;  %v127_v24 = vld [vmem:[#allocation3 + $0x50] sm:$0xff]  ;;  %v156_v26 = vadd.f32 %v155_v21, %v154_v20  ;;  %v159_v31 = vsel %vm96_vm0, %v139_v16, 0.0  ;;  %v118_v40 = vld [vmem:[#allocation3 + $0x8] sm:$0xff] }
  0x61   :  { %v129_v25 = vld [vmem:[#allocation3 + $0x60] sm:$0xff]  ;;  %v131_v27 = vld [vmem:[#allocation3 + $0x70] sm:$0xff]  ;;  %v141_v28 = vsub.f32 %v109_v15, %v125_v23  ;;  %v143_v29 = vsub.f32 %v111_v17, %v127_v24  ;;  %v120_v41 = vld [vmem:[#allocation3 + $0x18] sm:$0xff]  ;;  %v134_v48 = vsub.f32 %v102_v30, %v118_v40  ;;  %p1168_p2 = pnand %p1167_p1, %p1161_p12 }
  0x62   :  { %v145_v32 = vsub.f32 %v113_v18, %v129_v25  ;;  %v147_v33 = vsub.f32 %v115_v19, %v131_v27  ;;  %v158_v37 = vadd.f32 %v157_v22, %v156_v26  ;;  %v122_v42 = vld [vmem:[#allocation3 + $0x28] sm:$0xff]  ;;  %v149_v43 = vld [vmem:[#allocation2] sm:$0xff]  ;;  %v124_v47 = vld [vmem:[#allocation3 + $0x38] sm:$0xff]  ;;  %v136_v51 = vsub.f32 %v104_v34, %v120_v41 }
  0x63   :  { %v168_v38 = vsel %vm96_vm0, %v141_v28, 0.0  ;;  %v169_v39 = vsel %vm96_vm0, %v143_v29, 0.0  ;;  %v110_v49 = vld [vmem:[#allocation6 + $0x48] sm:$0xff]  ;;  %v138_v52 = vsub.f32 %v106_v35, %v122_v42  ;;  %v140_v53 = vsub.f32 %v108_v36, %v124_v47  ;;  %v112_v54 = vld [vmem:[#allocation6 + $0x58] sm:$0xff]  ;;  %v151_v63 = vld [vmem:[#allocation2 + $0x10] sm:$0xff] }
  0x64   :  { %v170_v44 = vadd.f32 %v169_v39, %v168_v38  ;;  %v171_v45 = vsel %vm96_vm0, %v145_v32, 0.0  ;;  %v173_v46 = vsel %vm96_vm0, %v147_v33, 0.0  ;;  %v160_v50 = vadd.f32 %v159_v31, %v158_v37  ;;  %v114_v55 = vld [vmem:[#allocation6 + $0x68] sm:$0xff]  ;;  %v116_v56 = vld [vmem:[#allocation6 + $0x78] sm:$0xff]  ;;  %v203_v3 = vld [vmem:[#allocation11] sm:$0xff] }
  0x65   :  { %v161_v58 = vsel %vm96_vm0, %v134_v48, 0.0  ;;  %v126_v59 = vld [vmem:[#allocation3 + $0x48] sm:$0xff]  ;;  %v128_v60 = vld [vmem:[#allocation3 + $0x58] sm:$0xff]  ;;  %v162_v0 = vsel %vm96_vm0, %v136_v51, 0.0  ;;  %v164_v1 = vsel %vm96_vm0, %v138_v52, 0.0  ;;  %v166_v9 = vsel %vm96_vm0, %v140_v53, 0.0 }
  0x66   :  { %v172_v57 = vadd.f32 %v171_v45, %v170_v44  ;;  %v130_v61 = vld [vmem:[#allocation3 + $0x68] sm:$0xff]  ;;  %v182_v62 = vadd.f32 %v160_v50, %v149_v43  ;;  %v132_v2 = vld [vmem:[#allocation3 + $0x78] sm:$0xff]  ;;  %v163_v5 = vadd.f32 %v162_v0, %v161_v58  ;;  %v142_v6 = vsub.f32 %v110_v49, %v126_v59  ;;  %v205_v35 = vld [vmem:[#allocation8] sm:$0xff] }
  0x67   :  { %v144_v7 = vsub.f32 %v112_v54, %v128_v60  ;;  %v204_v8 = vld [vmem:[#allocation11 + $0x8] sm:$0xff]  ;;  %v146_v10 = vsub.f32 %v114_v55, %v130_v61  ;;  %v148_v11 = vsub.f32 %v116_v56, %v132_v2  ;;  %v152_v24 = vld [vmem:[#allocation2 + $0x18] sm:$0xff]  ;;  %v207_v45 = vld [vmem:[#allocation9] sm:$0xff] }
  0x68   :  { %v174_v4 = vadd.f32 %v173_v46, %v172_v57  ;;  %186 = vst.msk [vmem:[#allocation2] sm:$0xff] %vm96_vm0, %v182_v62  ;;  %v1013_v12 = vpack.c.bf16 %v204_v8, %v203_v3  ;;  %v165_v14 = vadd.f32 %v164_v1, %v163_v5  ;;  %v175_v15 = vsel %vm96_vm0, %v142_v6, 0.0  ;;  %v150_v17 = vld [vmem:[#allocation2 + $0x8] sm:$0xff]  ;;  %v208_v50 = vld [vmem:[#allocation9 + $0x8] sm:$0xff] }
  0x69   :  { %v176_v16 = vsel %vm96_vm0, %v144_v7, 0.0  ;;  %v178_v19 = vsel %vm96_vm0, %v146_v10, 0.0  ;;  %v180_v21 = vsel %vm96_vm0, %v148_v11, 0.0  ;;  %v206_v43 = vld [vmem:[#allocation8 + $0x8] sm:$0xff] }
  0x6a   :  { %v184_v13 = vadd.f32 %v174_v4, %v151_v63  ;;  %v177_v18 = vadd.f32 %v176_v16, %v175_v15  ;;  %1014 = vmatprep.subr.bf16.mxu0 %v1013_v12  ;;  %1018 = vmatprep.subr.bf16.mxu1 %v1013_v12  ;;  %v167_v20 = vadd.f32 %v166_v9, %v165_v14 }
  0x6c   :  { %188 = vst.msk [vmem:[#allocation2 + $0x10] sm:$0xff] %vm96_vm0, %v184_v13  ;;  %v179_v22 = vadd.f32 %v178_v19, %v177_v18  ;;  %v183_v23 = vadd.f32 %v167_v20, %v150_v17 }
  0x6e   :  { %v181_v25 = vadd.f32 %v180_v21, %v179_v22  ;;  %187 = vst.msk [vmem:[#allocation2 + $0x8] sm:$0xff] %vm96_vm0, %v183_v23 }
  0x6f   :  { %v193_v26 = vld [vmem:[#allocation2] sm:$0xff] }
  0x70   :  { %v197_v27 = vmul.f32 0.25, %v193_v26  ;;  %v185_v28 = vadd.f32 %v181_v25, %v152_v24 }
  0x72   :  { %953 = vmatprep.mubr.msk.f32.mxu0 %vm96_vm0, %v197_v27  ;;  %189 = vst.msk [vmem:[#allocation2 + $0x18] sm:$0xff] %vm96_vm0, %v185_v28 }
  0x73   :  { %v195_v29 = vld [vmem:[#allocation2 + $0x10] sm:$0xff] }
  0x74   :  { %v199_v30 = vmul.f32 0.25, %v195_v29 }
  0x75   :  { %v194_v31 = vld [vmem:[#allocation2 + $0x8] sm:$0xff] }
  0x76   :  { %960 = vmatprep.mubr.msk.f32.mxu1 %vm96_vm0, %v199_v30  ;;  %v198_v32 = vmul.f32 0.25, %v194_v31  ;;  %v874_v31 = vlaneseq }
  0x78   :  { %954 = vmatmul.mubr.msk.f32.vlgmr.msra.gmra.mrb[0].mxu0 %vm96_vm0, %v198_v32 }
  0x79   :  { %v196_v33 = vld [vmem:[#allocation2 + $0x18] sm:$0xff]  ;;  %1016 = vmatpush3.bf16.msra.mxu0 %v1013_v12  ;;  %967 = vmatprep.mubr.msk.f32.mxu0 %vm96_vm0, %v197_v27 }
  0x7a   :  { %v200_v34 = vmul.f32 0.25, %v196_v33  ;;  %v877_v33 = vand.u32 127, %v874_v31 }
  0x7c   :  { %961 = vmatmul.mubr.msk.f32.vlgmr.msra.gmra.mrb[0].mxu1 %vm96_vm0, %v200_v34  ;;  %968 = vmatmul.mubr.msk.f32.vlgmr.msra.gmra.mrb[2].mxu0 %vm96_vm0, %v198_v32  ;;  %v875_v32 = vshrl.u32 %v874_v31, 7  ;;  %vm879_vm2 = vcmp.eq.s32.totalorder %v877_v33, 0 }
  0x7d   :  { %1020 = vmatpush3.bf16.msra.mxu1 %v1013_v12  ;;  %974 = vmatprep.mubr.msk.f32.mxu1 %vm96_vm0, %v199_v30 }
  0x7e   :  { %981 = vmatprep.mubr.msk.f32.mxu0 %vm96_vm0, %v205_v35  ;;  %vm878_vm1 = vcmp.eq.s32.totalorder %v875_v32, 0 }
  0x7f   :  { %vm880_vm3 = vmand %vm878_vm1, %vm879_vm2 }
  0x80   :  { %975 = vmatmul.mubr.msk.f32.vlgmr.msra.gmra.mrb[2].mxu1 %vm96_vm0, %v200_v34 }
  0x81   :  { %988 = vmatprep.mubr.msk.f32.mxu1 %vm96_vm0, %v205_v35 }
 0x14b   :  { %v955_v36 = vpop.f32.mrb[0].mxu0 }
 0x14c   :  { %v281_v37 = vpop.f32.mrb[1].mxu0 }
 0x14d   :  { %v1021_v38 = vpack.c.bf16 %v955_v36, %v281_v37 }
 0x14f   :  { %v962_v39 = vpop.f32.mrb[0].mxu1  ;;  %1022 = vmatprep.subr.bf16.mxu0 %v1021_v38  ;;  %v969_v42 = vpop.f32.mrb[2].mxu0 }
 0x150   :  { %v362_v40 = vpop.f32.mrb[1].mxu1  ;;  %1024 = vmatpush3.bf16.msra.mxu0 %v1021_v38  ;;  %v437_v44 = vpop.f32.mrb[3].mxu0 }
 0x151   :  { %v1025_v41 = vpack.c.bf16 %v962_v39, %v362_v40  ;;  %v1029_v47 = vpack.c.bf16 %v969_v42, %v437_v44 }
 0x153   :  { %v976_v46 = vpop.f32.mrb[2].mxu1  ;;  %1026 = vmatprep.subr.bf16.mxu1 %v1025_v41  ;;  %982 = vmatmul.mubr.msk.f32.vlgmr.msra.gmra.mrb[4].mxu0 %vm96_vm0, %v206_v43 }
 0x154   :  { %v512_v48 = vpop.f32.mrb[3].mxu1  ;;  %1028 = vmatpush3.bf16.msra.mxu1 %v1025_v41  ;;  %1030 = vmatprep.subr.bf16.mxu0 %v1029_v47 }
 0x155   :  { %v1033_v49 = vpack.c.bf16 %v976_v46, %v512_v48  ;;  %995 = vmatprep.mubr.msk.f32.mxu0 %vm96_vm0, %v207_v45  ;;  %1032 = vmatpush3.bf16.msra.mxu0 %v1029_v47 }
 0x157   :  { %1034 = vmatprep.subr.bf16.mxu1 %v1033_v49  ;;  %989 = vmatmul.mubr.msk.f32.vlgmr.msra.gmra.mrb[4].mxu1 %vm96_vm0, %v206_v43 }
 0x158   :  { %1036 = vmatpush3.bf16.msra.mxu1 %v1033_v49  ;;  %1002 = vmatprep.mubr.msk.f32.mxu1 %vm96_vm0, %v207_v45 }
 0x159   :  { %996 = vmatmul.mubr.msk.f32.vlgmr.msra.gmra.mrb[6].mxu0 %vm96_vm0, %v208_v50 }
 0x15b   :  { %1003 = vmatmul.mubr.msk.f32.vlgmr.msra.gmra.mrb[6].mxu1 %vm96_vm0, %v208_v50 }
 0x226   :  { %v983_v51 = vpop.f32.mrb[4].mxu0 }
 0x227   :  { %v854_v52 = vand.u32 2147483647, %v983_v51  ;;  %v593_v53 = vpop.f32.mrb[5].mxu0 }
 0x228   :  { %v853_v54 = vand.u32 2147483647, %v593_v53 }
 0x229   :  { %v858_v55 = vsel %vm96_vm0, %v854_v52, 0.0 }
 0x22a   :  { %v990_v56 = vpop.f32.mrb[4].mxu1  ;;  %v857_v57 = vsel %vm96_vm0, %v853_v54, 0.0 }
 0x22b   :  { %v668_v58 = vpop.f32.mrb[5].mxu1  ;;  %v859_v59 = vadd.f32 %v858_v55, %v857_v57  ;;  %v856_v60 = vand.u32 2147483647, %v990_v56 }
 0x22c   :  { %v855_v61 = vand.u32 2147483647, %v668_v58  ;;  %v997_v62 = vpop.f32.mrb[6].mxu0 }
 0x22d   :  { %v834_v63 = vand.u32 2147483647, %v997_v62  ;;  %v749_v0 = vpop.f32.mrb[7].mxu0  ;;  %v862_v10 = vsel %vm96_vm0, %v856_v60, 0.0 }
 0x22e   :  { %v860_v1 = vsel %vm96_vm0, %v855_v61, 0.0  ;;  %v833_v2 = vand.u32 2147483647, %v749_v0  ;;  %v1004_v3 = vpop.f32.mrb[6].mxu1 }
 0x22f   :  { %v838_v4 = vsel %vm96_vm0, %v834_v63, 0.0  ;;  %v824_v5 = vpop.f32.mrb[7].mxu1  ;;  %v861_v6 = vadd.f32 %v860_v1, %v859_v59  ;;  %v836_v8 = vand.u32 2147483647, %v1004_v3 }
 0x230   :  { %v837_v7 = vsel %vm96_vm0, %v833_v2, 0.0  ;;  %v835_v9 = vand.u32 2147483647, %v824_v5 }
 0x231   :  { %v839_v11 = vadd.f32 %v838_v4, %v837_v7  ;;  %v863_v12 = vadd.f32 %v862_v10, %v861_v6  ;;  %v842_v15 = vsel %vm96_vm0, %v836_v8, 0.0 }
 0x232   :  { %v840_v13 = vsel %vm96_vm0, %v835_v9, 0.0 }
 0x233   :  { %v841_v14 = vadd.f32 %v840_v13, %v839_v11 }
 0x235   :  { %v843_v16 = vadd.f32 %v842_v15, %v841_v14 }
 0x237   :  { %844 = vadd.xlane.f32.xlu0 %v843_v16 }
 0x23b   :  { %864 = vadd.xlane.f32.xlu0 %v863_v12 }
 0x2c4   :  { %v845_v17 = vpop.xlane.xlu0 %844 }
 0x2c5   :  { %v846_v18 = vrot.slane %v845_v17, 4 }
 0x2c7   :  { %v847_v19 = vadd.f32 %v846_v18, %v845_v17 }
 0x2c8   :  { %v865_v20 = vpop.xlane.xlu0 %864 }
 0x2c9   :  { %v848_v21 = vrot.slane %v847_v19, 2  ;;  %v866_v22 = vrot.slane %v865_v20, 4 }
 0x2cb   :  { %v867_v23 = vadd.f32 %v866_v22, %v865_v20  ;;  %v849_v24 = vadd.f32 %v848_v21, %v847_v19 }
 0x2cd   :  { %v868_v25 = vrot.slane %v867_v23, 2  ;;  %v850_v26 = vrot.slane %v849_v24, 1 }
 0x2cf   :  { %v869_v27 = vadd.f32 %v868_v25, %v867_v23  ;;  %v851_v28 = vadd.f32 %v850_v26, %v849_v24 }
 0x2d1   :  { %1037 = vpush %v851_v28  ;;  %v870_v29 = vrot.slane %v869_v27, 1 }
 0x2d3   :  { %v871_v30 = vadd.f32 %v870_v29, %v869_v27 }
 0x2d5   :  { %1039 = vpush %v871_v30 }
 0x302   :  { %s1038_s5 = spop %1037 }
 0x306   :  { %s1040_s10 = spop %1039 }
 0x307   :  { %s873_s13 = sadd.f32 %s1040_s10, %s1038_s5 }
 0x309   :  { %v881_v34 = vstv %s873_s13 }
 0x30a   :  { %v882_v35 = vsel %vm880_vm3, %v881_v34, 0.0 }
 0x30b   :  { %883 = vst [vmem:[#allocation12] sm:$0xff] %v882_v35 }
 0x30c   :  { %1171 = shalt.err (!%p1168_p2)
}
 0x30d   :  { %s1172_s17 = scalar_lea.hbm %s1395_s6, 128 }
 0x30e   :  { %p1173_p3 = scmp.ne.s32.totalorder %s1395_s6, %s1172_s17  ;;  %p1176_p4 = scmp.lt.u32.totalorder %s1172_s17, %s1395_s6 }
 0x310   :  { %p1178_p5 = pnand %p1176_p4, %p1173_p3 }
 0x312   :  { %1181 = shalt.err (!%p1178_p5)
}
 0x313   :  { %893 = dma.vmem_to_hbm [thread:$0]  %s891_s12, 128, %s1395_s6, [#allocation5]  }
 0x314   :  { %1188 = dma.done.wait [#allocation5], 128  }
 0x315   :  { %1189 = vsyncadd [#allocation5], 4294967168 }
 0x316   :  { %897 = vsyncpa [#allocation4], 1 }
 0x317   :  { %898 = vsyncpa [#allocation7], 1 }
 0x318   :  { %899 = vsyncpa [#allocation10], 1 }
 0x319   :  { %900 = vsyncpa [#allocation5], 1 }

</bundles_post_ra>
